<compile_context>
chip_gen: v6e
topology: v6e:2x2x1
jax: 0.10.0
libtpu: 0.0.40
codegen_flags: <defaults>
</compile_context>

<pallas_src>
import functools

import jax
import jax.numpy as jnp
from jax import lax
from jax.experimental import pallas as pl
from jax.experimental.pallas import tpu as pltpu

factors = [1, 1, 1, 1, 1 / 2, 1 / 4, 1 / 8, 1 / 16, 1 / 32]

VMEM_LIMIT = 32 * 1024 * 1024       # scoped-VMEM budget that is safe on v5e/v6e/v7x


# --------------------------------------------------------------------------
# small helpers
# --------------------------------------------------------------------------
def _round_up(x, m):
    return (x + m - 1) // m * m


def _cparams(sem):
    return pltpu.CompilerParams(dimension_semantics=sem, vmem_limit_bytes=VMEM_LIMIT)


def _choose_bm(m):
    """Row tile for the GEMM kernels: largest tile that fits comfortably in VMEM,
    >=2 grid steps when M is big enough (v7x has 2 TensorCores), multiple of 16
    (bf16 sublane packing)."""
    if m >= 1024:
        return 512
    if m >= 64:
        return _round_up(m // 2, 16)
    return _round_up(max(m, 1), 16)


def avg_pool2(x):
    # AvgPool2d(kernel=2, stride=2): cheap data movement, kept as JAX glue.
    n, h, w, c = x.shape
    return x.reshape(n, h // 2, 2, w // 2, 2, c).mean(axis=(2, 4))


def _append_stat(x, stat):
    # minibatch-std channel concat (glue). Shared by Pallas and reference paths.
    # TODO(synk): write the broadcast stat channel directly from the kernel
    # (input_output_aliases) instead of this XLA concat for large activations.
    n, h, w, _ = x.shape
    smap = jnp.broadcast_to(stat.astype(x.dtype), (n, h, w, 1))
    return jnp.concatenate([x, smap], axis=-1)


def _valid_mask(hp, wp, hout, wout):
    hh = jnp.arange(hp) < hout
    ww = jnp.arange(wp) < wout
    return (hh[:, None] & ww[None, :]).astype(jnp.float32).reshape(hp * wp, 1)


def _to_flat(x, pad, ext_rows):
    """(N,H,W,C) -> (N, Hp*Wp + ext_rows, C): zero spatial pad, contiguous flatten,
    trailing zero rows as halo for the shifted tap reads."""
    n, h, w, c = x.shape
    xp = jnp.pad(x, ((0, 0), (pad, pad), (pad, pad), (0, 0))) if pad else x
    hp, wp = h + 2 * pad, w + 2 * pad
    flat = xp.reshape(n, hp * wp, c)
    return jnp.pad(flat, ((0, 0), (0, ext_rows), (0, 0)))


def _from_flat(out_flat, n, hp, wp, hout, wout, c):
    return out_flat.reshape(n, hp, wp, c)[:, :hout, :wout, :]


# --------------------------------------------------------------------------
# Pallas kernels
# --------------------------------------------------------------------------
def _accum_taps(src_ref, base, w_ref, k, wp, l):
    """Accumulate the k*k conv taps: sum_t  src[base+off_t : base+off_t+l, :] @ W_t.
    src_ref: (rows, Cin) f32 VMEM ref; w_ref: (k*k, Cin, Cout) bf16 ref."""
    acc = None
    for ky in range(k):
        for kx in range(k):
            xs = src_ref[pl.ds(base + ky * wp + kx, l), :]
            wt = w_ref[ky * k + kx].astype(jnp.float32)
            y = jnp.dot(xs, wt, preferred_element_type=jnp.float32)
            acc = y if acc is None else acc + y
    return acc


def _gemm_kernel(x_ref, w_ref, b_ref, o_ref, *, act):
    """Fused x @ W + b (+ LeakyReLU 0.2). x, W bf16; accumulate + epilogue in f32."""
    y = jnp.dot(x_ref[...], w_ref[...], preferred_element_type=jnp.float32) + b_ref[...]
    if act:
        y = jnp.where(y > 0, y, 0.2 * y)
    o_ref[...] = y.astype(o_ref.dtype)


def _gemm_fade_kernel(x_ref, w_ref, b_ref, prev_ref, o_ref, *, alpha):
    """Down-path RGB conv with fade_in fused into the epilogue:
       alpha * prev + (1-alpha) * LeakyReLU(x @ W + b)."""
    y = jnp.dot(x_ref[...], w_ref[...], preferred_element_type=jnp.float32) + b_ref[...]
    y = jnp.where(y > 0, y, 0.2 * y)
    o_ref[...] = (alpha * prev_ref[...].astype(jnp.float32) + (1.0 - alpha) * y
                  ).astype(o_ref.dtype)


def _flatconv_kernel(x_ref, w_ref, b_ref, o_ref, xf_ref, *, k, wp, l, act):
    """Single KxK conv on one flattened padded image (no HBM im2col)."""
    xf_ref[...] = x_ref[...].astype(jnp.float32)
    y = _accum_taps(xf_ref, 0, w_ref, k, wp, l) + b_ref[...]
    if act:
        y = jnp.where(y > 0, y, 0.2 * y)
    o_ref[...] = y.astype(o_ref.dtype)


def _convblock_kernel(x_ref, w1_ref, b1_ref, w2_ref, b2_ref, mask_ref,
                      o_ref, xf_ref, mid_ref, *, wp, l, s0):
    """Fused ConvBlock (use_pixel_norm=False): 3x3 conv + LeakyReLU + 3x3 conv + LeakyReLU.
    The intermediate activation stays in VMEM (mid_ref); mask re-establishes the zero
    padding border between the two convolutions."""
    k = 3
    xf_ref[...] = x_ref[...].astype(jnp.float32)

    a1 = _accum_taps(xf_ref, 0, w1_ref, k, wp, l) + b1_ref[...]
    a1 = jnp.where(a1 > 0, a1, 0.2 * a1)
    a1 = a1 * mask_ref[...]                                  # zero out invalid/garbage rows
    a1 = a1.astype(jnp.bfloat16).astype(jnp.float32)         # match inter-layer bf16 rounding

    mid_ref[...] = jnp.zeros_like(mid_ref)
    mid_ref[pl.ds(s0, l), :] = a1                            # s0 is sublane-aligned

    a2 = _accum_taps(mid_ref, s0 - wp - 1, w2_ref, k, wp, l) + b2_ref[...]
    a2 = jnp.where(a2 > 0, a2, 0.2 * a2)
    o_ref[...] = a2.astype(o_ref.dtype)


def _mbstd_kernel(x_ref, o_ref, acc_ref, *, n, f_true):
    """Tiled minibatch-std: per-column unbiased std over batch, accumulated mean.
    Zero-padded columns contribute std 0, so dividing by the true feature count is exact.
    Note: matches torch.std(dim=0) (unbiased) -> NaN for batch size 1, like PyTorch."""
    @pl.when(pl.program_id(0) == 0)
    def _():
        acc_ref[0] = 0.0
    x = x_ref[...].astype(jnp.float32)
    mean = jnp.mean(x, axis=0, keepdims=True)
    var = jnp.sum((x - mean) ** 2, axis=0, keepdims=True) / (n - 1)
    acc_ref[0] += jnp.sum(jnp.sqrt(var))
    o_ref[0, 0] = acc_ref[0] / f_true


# --------------------------------------------------------------------------
# Pallas wrappers
# --------------------------------------------------------------------------
def conv_gemm_pallas(x, p, act):
    """Convs whose im2col is a pure reshape (K==1, or full-window K==H==W with pad 0)."""
    n, h, w, cin = x.shape
    k, pad = p["ksize"], p["pad"]
    hout, wout = h + 2 * pad - k + 1, w + 2 * pad - k + 1
    wm, b = p["w2d_s"], p["b"]
    kdim, cout = wm.shape
    m = n * hout * wout
    x2d = x.reshape(m, kdim).astype(jnp.bfloat16)

    bm = _choose_bm(m)
    m_pad = _round_up(m, bm)
    if m_pad != m:
        x2d = jnp.pad(x2d, ((0, m_pad - m), (0, 0)))

    out = pl.pallas_call(
        functools.partial(_gemm_kernel, act=act),
        out_shape=jax.ShapeDtypeStruct((m_pad, cout), jnp.bfloat16),
        grid=(m_pad // bm,),
        in_specs=[pl.BlockSpec((bm, kdim), lambda i: (i, 0)),
                  pl.BlockSpec((kdim, cout), lambda i: (0, 0)),
                  pl.BlockSpec((1, cout), lambda i: (0, 0))],
        out_specs=pl.BlockSpec((bm, cout), lambda i: (i, 0)),
        compiler_params=_cparams(("parallel",)),
    )(x2d, wm, b)
    if m_pad != m:
        out = out[:m]
    return out.reshape(n, hout, wout, cout)


def conv_flat_pallas(x, p, act):
    """Single windowed conv (K>1), per image, in-kernel tap accumulation (no HBM im2col)."""
    n, h, w, cin = x.shape
    k, pad = p["ksize"], p["pad"]
    hp, wp = h + 2 * pad, w + 2 * pad
    hout, wout = hp - k + 1, wp - k + 1
    l = hp * wp
    l_ext = _round_up(l + (k - 1) * (wp + 1), 8)
    kdim, cout = p["w2d_s"].shape
    w3 = p["w2d_s"].reshape(k * k, kdim // (k * k), cout)

    xf = _to_flat(x.astype(jnp.bfloat16), pad, l_ext - l)

    out = pl.pallas_call(
        functools.partial(_flatconv_kernel, k=k, wp=wp, l=l, act=act),
        out_shape=jax.ShapeDtypeStruct((n, l, cout), jnp.bfloat16),
        grid=(n,),
        in_specs=[pl.BlockSpec((None, l_ext, cin), lambda i: (i, 0, 0)),
                  pl.BlockSpec((k * k, cin, cout), lambda i: (0, 0, 0)),
                  pl.BlockSpec((1, cout), lambda i: (0, 0))],
        out_specs=pl.BlockSpec((None, l, cout), lambda i: (i, 0, 0)),
        scratch_shapes=[pltpu.VMEM((l_ext, cin), jnp.float32)],
        compiler_params=_cparams(("parallel",)),
    )(xf, w3, p["b"])
    return _from_flat(out, n, hp, wp, hout, wout, cout)


def conv_pallas(x, p, act):
    k, pad = p["ksize"], p["pad"]
    n, h, w, _ = x.shape
    if k == 1 or (pad == 0 and k == h and k == w):
        return conv_gemm_pallas(x, p, act)
    return conv_flat_pallas(x, p, act)


def convblock_pallas(x, blk):
    """Fused ConvBlock: two 3x3 convs + LeakyReLU, intermediate kept in VMEM.
    TODO(synk): add row-band tiling inside each image for very large resolutions
    (currently one whole padded image per grid step must fit in VMEM)."""
    p1, p2 = blk["conv1"], blk["conv2"]
    n, h, w, cin = x.shape
    hp, wp = h + 2, w + 2
    l = hp * wp
    l_ext = _round_up(l + 2 * (wp + 1), 8)
    s0 = _round_up(wp + 1, 8)
    cmid = p1["w2d_s"].shape[1]
    mid_ext = _round_up(s0 + l + 2 * wp + 2, 8)

    w1 = p1["w2d_s"].reshape(9, cin, cmid)
    w2 = p2["w2d_s"].reshape(9, cmid, cmid)
    mask = _valid_mask(hp, wp, h, w)
    xf = _to_flat(x.astype(jnp.bfloat16), 1, l_ext - l)

    out = pl.pallas_call(
        functools.partial(_convblock_kernel, wp=wp, l=l, s0=s0),
        out_shape=jax.ShapeDtypeStruct((n, l, cmid), jnp.bfloat16),
        grid=(n,),
        in_specs=[pl.BlockSpec((None, l_ext, cin), lambda i: (i, 0, 0)),
                  pl.BlockSpec((9, cin, cmid), lambda i: (0, 0, 0)),
                  pl.BlockSpec((1, cmid), lambda i: (0, 0)),
                  pl.BlockSpec((9, cmid, cmid), lambda i: (0, 0, 0)),
                  pl.BlockSpec((1, cmid), lambda i: (0, 0)),
                  pl.BlockSpec((l, 1), lambda i: (0, 0))],
        out_specs=pl.BlockSpec((None, l, cmid), lambda i: (i, 0, 0)),
        scratch_shapes=[pltpu.VMEM((l_ext, cin), jnp.float32),
                        pltpu.VMEM((mid_ext, cmid), jnp.float32)],
        compiler_params=_cparams(("parallel",)),
    )(xf, w1, p1["b"], w2, p2["b"], mask)
    return _from_flat(out, n, hp, wp, h, w, cmid)


def rgb_fade_pallas(alpha, x_pooled, rgb_p, out_prev):
    """fade_in(alpha, out_prev, LeakyReLU(rgb_1x1(x_pooled))) fused into one GEMM kernel."""
    n, h, w, cin = x_pooled.shape
    wm, b = rgb_p["w2d_s"], rgb_p["b"]
    cout = wm.shape[1]
    m = n * h * w
    x2d = x_pooled.reshape(m, cin).astype(jnp.bfloat16)
    prev2d = out_prev.reshape(m, cout).astype(jnp.bfloat16)

    bm = _choose_bm(m)
    m_pad = _round_up(m, bm)
    if m_pad != m:
        x2d = jnp.pad(x2d, ((0, m_pad - m), (0, 0)))
        prev2d = jnp.pad(prev2d, ((0, m_pad - m), (0, 0)))

    out = pl.pallas_call(
        functools.partial(_gemm_fade_kernel, alpha=float(alpha)),
        out_shape=jax.ShapeDtypeStruct((m_pad, cout), jnp.bfloat16),
        grid=(m_pad // bm,),
        in_specs=[pl.BlockSpec((bm, cin), lambda i: (i, 0)),
                  pl.BlockSpec((cin, cout), lambda i: (0, 0)),
                  pl.BlockSpec((1, cout), lambda i: (0, 0)),
                  pl.BlockSpec((bm, cout), lambda i: (i, 0))],
        out_specs=pl.BlockSpec((bm, cout), lambda i: (i, 0)),
        compiler_params=_cparams(("parallel",)),
    )(x2d, wm, b, prev2d)
    if m_pad != m:
        out = out[:m]
    return out.reshape(n, h, w, cout)


def mbstd_pallas(x):
    """torch-style minibatch std (unbiased over batch, mean), appended as extra channel."""
    n, h, w, c = x.shape
    f = h * w * c
    x2d = x.reshape(n, f)
    fc = f if f <= 2048 else 2048
    f_pad = _round_up(f, fc)
    if f_pad != f:
        x2d = jnp.pad(x2d, ((0, 0), (0, f_pad - f)))

    stat = pl.pallas_call(
        functools.partial(_mbstd_kernel, n=n, f_true=float(f)),
        out_shape=jax.ShapeDtypeStruct((1, 1), jnp.float32),
        grid=(f_pad // fc,),
        in_specs=[pl.BlockSpec((n, fc), lambda i: (0, i))],
        out_specs=pl.BlockSpec(memory_space=pltpu.MemorySpace.SMEM),
        scratch_shapes=[pltpu.SMEM((1,), jnp.float32)],
        compiler_params=_cparams(("arbitrary",)),
    )(x2d)
    return _append_stat(x, stat[0, 0])


PALLAS_OPS = {"conv": conv_pallas, "block": convblock_pallas,
              "rgb_fade": rgb_fade_pallas, "mbstd": mbstd_pallas}


# --------------------------------------------------------------------------
# Parameter init (mirrors nn.init.normal_(weight), zeros_(bias); scale folded in)
# --------------------------------------------------------------------------
def init_eqconv(key, cin, cout, ksize, pad, gain=2):
    w_oihw = jax.random.normal(key, (cout, cin, ksize, ksize), jnp.float32)   # PyTorch OIHW
    w_hwio = jnp.transpose(w_oihw, (2, 3, 1, 0))                              # (K, K, Cin, Cout)
    scale = (gain / (cin * ksize ** 2)) ** 0.5
    w2d_s = (w_hwio.reshape(ksize * ksize * cin, cout) * scale).astype(jnp.bfloat16)
    return {"w2d_s": w2d_s, "b": jnp.zeros((1, cout), jnp.float32),
            "ksize": ksize, "pad": pad}


def init_critic(key, in_channels, img_channels):
    keys = iter(jax.random.split(key, 64))
    params = {"prog": [], "rgb": []}
    for i in range(len(factors) - 1, 0, -1):
        cin = int(in_channels * factors[i])
        cout = int(in_channels * factors[i - 1])
        params["prog"].append({
            "conv1": init_eqconv(next(keys), cin, cout, 3, 1),
            "conv2": init_eqconv(next(keys), cout, cout, 3, 1),
        })
        params["rgb"].append(init_eqconv(next(keys), img_channels, cin, 1, 0))
    params["rgb"].append(init_eqconv(next(keys), img_channels, in_channels, 1, 0))  # initial_rgb
    params["final"] = [
        init_eqconv(next(keys), in_channels + 1, in_channels, 3, 1),
        init_eqconv(next(keys), in_channels, in_channels, 4, 0),
        init_eqconv(next(keys), in_channels, 1, 1, 0),
    ]
    return params


# --------------------------------------------------------------------------
# Critic forward (control flow shared between Pallas and reference paths)
# --------------------------------------------------------------------------
def critic_forward(params, x, alpha, steps, ops):
    n_blocks = len(params["prog"])
    cur_step = n_blocks - steps

    out = ops["conv"](x, params["rgb"][cur_step], True)
    if steps == 0:
        out = ops["mbstd"](out)
    else:
        out = avg_pool2(ops["block"](out, params["prog"][cur_step]))
        out = ops["rgb_fade"](alpha, avg_pool2(x), params["rgb"][cur_step + 1], out)
        for s in range(cur_step + 1, n_blocks):
            out = avg_pool2(ops["block"](out, params["prog"][s]))
        out = ops["mbstd"](out)

    out = ops["conv"](out, params["final"][0], True)
    out = ops["conv"](out, params["final"][1], True)
    out = ops["conv"](out, params["final"][2], False)
    return out.reshape(out.shape[0], -1)


# --------------------------------------------------------------------------
# Pure-JAX reference (bf16 inputs / f32 accumulation, matching the kernels)
# --------------------------------------------------------------------------
def _ref_conv_f32(x, p, act):
    k, pad = p["ksize"], p["pad"]
    kdim, cout = p["w2d_s"].shape
    w = p["w2d_s"].reshape(k, k, kdim // (k * k), cout)
    y = lax.conv_general_dilated(
        x.astype(jnp.bfloat16), w, (1, 1), [(pad, pad), (pad, pad)],
        dimension_numbers=("NHWC", "HWIO", "NHWC"),
        preferred_element_type=jnp.float32)
    y = y + p["b"].reshape(1, 1, 1, -1)
    return jnp.where(y > 0, y, 0.2 * y) if act else y


def ref_conv(x, p, act):
    return _ref_conv_f32(x, p, act).astype(jnp.bfloat16)


def ref_block(x, blk):
    return ref_conv(ref_conv(x, blk["conv1"], True), blk["conv2"], True)


def ref_rgb_fade(alpha, x_pooled, rgb_p, out_prev):
    y = _ref_conv_f32(x_pooled, rgb_p, True)
    return (alpha * out_prev.astype(jnp.float32) + (1.0 - alpha) * y).astype(jnp.bfloat16)


def ref_mbstd(x):
    xf = x.astype(jnp.float32).reshape(x.shape[0], -1)
    mean = jnp.mean(xf, axis=0, keepdims=True)
    var = jnp.sum((xf - mean) ** 2, axis=0, keepdims=True) / (x.shape[0] - 1)
    stat = jnp.mean(jnp.sqrt(var))
    return _append_stat(x, stat)


REF_OPS = {"conv": ref_conv, "block": ref_block,
           "rgb_fade": ref_rgb_fade, "mbstd": ref_mbstd}


# --------------------------------------------------------------------------
if __name__ == "__main__":
    in_channels, img_channels = 32, 3
    steps, alpha = 2, 0.5
    batch = 2
    res = 4 * 2 ** steps   # 16x16 image at steps=2

    key = jax.random.PRNGKey(0)
    pkey, xkey = jax.random.split(key)
    params = init_critic(pkey, in_channels, img_channels)

    x_nchw = jax.random.normal(xkey, (batch, img_channels, res, res), jnp.float32)  # PyTorch NCHW
    x = jnp.transpose(x_nchw, (0, 2, 3, 1)).astype(jnp.bfloat16)                    # NHWC, bf16

    out = critic_forward(params, x, alpha, steps, PALLAS_OPS)
    out = jax.block_until_ready(out)

    ref = jax.block_until_ready(critic_forward(params, x, alpha, steps, REF_OPS))

    assert out.shape == (batch, 1), out.shape
    o32 = out.astype(jnp.float32)
    r32 = ref.astype(jnp.float32)
    err = float(jnp.max(jnp.abs(o32 - r32)))
    tol = 1e-2 * (float(jnp.max(jnp.abs(r32))) + 1.0)
    assert err <= tol, f"max abs err {err} > tol {tol}"

    print("KERNEL_OK")
</pallas_src>

<mosaic_0001>
module attributes {stable_mosaic.version = 11 : i64} {
  func.func @_gemm_kernel(%arg0: i32, %arg1: memref<256x3xbf16, #tpu.memory_space<vmem>>, %arg2: memref<3x32xbf16, #tpu.memory_space<vmem>>, %arg3: memref<1x32xf32, #tpu.memory_space<vmem>>, %arg4: memref<256x32xbf16, #tpu.memory_space<vmem>>) attributes {dimension_semantics = [#tpu.dimension_semantics<parallel>], iteration_bounds = array<i64: 2>, scalar_prefetch = 0 : i64, scratch_operands = 0 : i64, tpu.core_type = #tpu.core_type<tc>, window_params = [{transform_indices = @transform_0, window_bounds = array<i64: 256, 3>}, {pipeline_mode = #tpu.pipeline_mode<synchronous>, transform_indices = @transform_1, window_bounds = array<i64: 3, 32>}, {pipeline_mode = #tpu.pipeline_mode<synchronous>, transform_indices = @transform_2, window_bounds = array<i64: 1, 32>}, {transform_indices = @transform_3, window_bounds = array<i64: 256, 32>}]} {
    %c0 = arith.constant 0 : index
    %c0_0 = arith.constant 0 : index
    %0 = vector.load %arg1[%c0, %c0_0] : memref<256x3xbf16, #tpu.memory_space<vmem>>, vector<256x3xbf16>
    %c0_1 = arith.constant 0 : index
    %c0_2 = arith.constant 0 : index
    %1 = vector.load %arg2[%c0_1, %c0_2] : memref<3x32xbf16, #tpu.memory_space<vmem>>, vector<3x32xbf16>
    %cst = arith.constant dense<0.000000e+00> : vector<256x32xf32>
    %2 = tpu.matmul %0, %1, %cst {dimension_numbers = #tpu.dot_dimension_numbers<[1], [0], [0], [1], [0, 0, 1, 1], [], []>} : vector<256x3xbf16>, vector<3x32xbf16>, vector<256x32xf32> -> vector<256x32xf32>
    %c0_3 = arith.constant 0 : index
    %c0_4 = arith.constant 0 : index
    %3 = vector.load %arg3[%c0_3, %c0_4] : memref<1x32xf32, #tpu.memory_space<vmem>>, vector<1x32xf32>
    %4 = vector.broadcast %3 : vector<1x32xf32> to vector<256x32xf32>
    %5 = arith.addf %2, %4 : vector<256x32xf32>
    %cst_5 = arith.constant 0.000000e+00 : f32
    %6 = vector.broadcast %cst_5 : f32 to vector<256x32xf32>
    %7 = arith.cmpf ogt, %5, %6 : vector<256x32xf32>
    %cst_6 = arith.constant 2.000000e-01 : f32
    %8 = vector.broadcast %cst_6 : f32 to vector<256x32xf32>
    %9 = arith.mulf %8, %5 : vector<256x32xf32>
    %10 = arith.select %7, %5, %9 : vector<256x32xi1>, vector<256x32xf32>
    %11 = arith.truncf %10 : vector<256x32xf32> to vector<256x32xbf16>
    %c0_7 = arith.constant 0 : index
    %c0_8 = arith.constant 0 : index
    %12 = vector.load %arg4[%c0_7, %c0_8] : memref<256x32xbf16, #tpu.memory_space<vmem>>, vector<256x32xbf16>
    tpu.vector_store %arg4[%c0_7, %c0_8], %11 {strides = array<i32>} : memref<256x32xbf16, #tpu.memory_space<vmem>>, vector<256x32xbf16>,
    return
  }
  func.func @transform_0(%arg0: i32) -> (i32, i32) {
    %c0_i32 = arith.constant 0 : i32
    %c0_i32_0 = arith.constant 0 : i32
    return %arg0, %c0_i32 : i32, i32
  }
  func.func @transform_1(%arg0: i32) -> (i32, i32) {
    %c0_i32 = arith.constant 0 : i32
    %c0_i32_0 = arith.constant 0 : i32
    %c0_i32_1 = arith.constant 0 : i32
    return %c0_i32, %c0_i32_0 : i32, i32
  }
  func.func @transform_2(%arg0: i32) -> (i32, i32) {
    %c0_i32 = arith.constant 0 : i32
    %c0_i32_0 = arith.constant 0 : i32
    %c0_i32_1 = arith.constant 0 : i32
    return %c0_i32, %c0_i32_0 : i32, i32
  }
  func.func @transform_3(%arg0: i32) -> (i32, i32) {
    %c0_i32 = arith.constant 0 : i32
    %c0_i32_0 = arith.constant 0 : i32
    return %arg0, %c0_i32 : i32, i32
  }
}

</mosaic_0001>

<bundles_post_ra>
// kernel: tpu_custom_call.1
= control target key start
LH: loop header
LB: loop body
LE: loop exit
PB: predicated region body
PF: predicated region fallthrough
CT: control target
= control target key end

     0   :  { %s1040_s12 = smov 0   ;;  %s1205_s0 = inlined_call_operand.vmem [shape: bf16[512,3], index: 0, kind: input, shape index: {}]   ;;  %s1206_s1 = inlined_call_operand.vmem [shape: bf16[3,32], index: 1, kind: input, shape index: {}]   ;;  %s1207_s2 = inlined_call_operand.vmem [shape: f32[1,32], index: 2, kind: input, shape index: {}]   ;;  %s1208_s3 = inlined_call_operand.vmem [shape: bf16[512,32], index: 3, kind: output, shape index: {}]  }
   0x1 LB: > { %s825_s13 = sadd.s32 4294967295, %s1017_s12   ;;  %p829_p0 = scmp.ge.s32.totalorder %s1017_s12, 1  ;;  %s1017_s12 = sphi %s1040_s12, %s13_s12  }
   0x2   : > { %p138_p1 = scmp.lt.s32.totalorder %s1017_s12, 3 }
   0x4   : > { %p139_p2 = pnand %p829_p0, %p138_p1 }
   0x5   : > { %s830_s16 = sshll.u32 (!%p139_p2), %s825_s13, 5 }
   0x6   : > { %142 = sbr.rel (%p139_p2) target bundleno = 259 (0x103), region = 32  ;;  %p163_p3 = scmp.lt.s32.totalorder (!%p139_p2), %s830_s16, 63 }
   0xb   : > { %v207_v0 = vld [vmem:[%s1206_s1] sm:$0x3]  ;;  %vm344_vm0 = vcmask 1040384   ;;  %vm345_vm1 = vcmask 1041408   ;;  %v1019_v1 = vmov 65535   ;;  %s1210_s16 = smov (!%p163_p3, %s830_s16), 63 }
   0xc   : > { %v346_v2 = vsel %vm344_vm0, 4294967295, %v1019_v1  ;;  %s831_s17 = sshll.u32 %s1210_s16, 2  ;;  %vm295_vm2 = vcmask 23552   ;;  %v1096_v21 = vld [vmem:[%s1207_s2] ss:$0 sm:$0xff]  ;;  %vm736_vm4 = vcmask 257024  }
   0xd   : > { %v347_v3 = vsel %vm345_vm1, %v346_v2, 0  ;;  %s1059_s20 = scalar_lea.vmem %s1205_s0, %s831_s17  ;;  %s1107_s25 = scalar_lea.vmem %s1208_s3, %s831_s17 }
   0xe   : > { %v349_v4 = vand.u32 %v347_v3, %v207_v0  ;;  %v995_v5 = vld [vmem:[%s1059_s20] sm:$0xff]   ;;  %v997_v7 = vld [vmem:[%s1059_s20 + $0x8] sm:$0xff]   ;;  %v999_v9 = vld [vmem:[%s1059_s20 + $0x10] sm:$0xff]  }
   0xf   : > { %v996_v6 = vld [vmem:[%s1059_s20 + $0x40] sm:$0xff]   ;;  %952 = vmatprep.mubr.msk.bf16.mxu0 %vm295_vm2, %v995_v5  ;;  %v998_v8 = vld [vmem:[%s1059_s20 + $0x48] sm:$0xff]   ;;  %v1000_v10 = vld [vmem:[%s1059_s20 + $0x50] sm:$0xff]  }
  0x10   : > { %950 = vmatprep.subr.bf16.mxu0 %v349_v4  ;;  %984 = vmatprep.subr.bf16.mxu1 %v349_v4  ;;  %v1001_v11 = vld [vmem:[%s1059_s20 + $0x18] sm:$0xff]   ;;  %v1003_v13 = vld [vmem:[%s1059_s20 + $0x20] sm:$0xff]   ;;  %v1005_v15 = vld [vmem:[%s1059_s20 + $0x28] sm:$0xff]  }
  0x11   : > { %951 = vmatpush3.bf16.msra.mxu0 %v349_v4  ;;  %985 = vmatpush3.bf16.msra.mxu1 %v349_v4  ;;  %v1002_v12 = vld [vmem:[%s1059_s20 + $0x58] sm:$0xff]   ;;  %v1004_v14 = vld [vmem:[%s1059_s20 + $0x60] sm:$0xff]   ;;  %v1006_v16 = vld [vmem:[%s1059_s20 + $0x68] sm:$0xff]  }
  0x12   : > { %968 = vmatprep.mubr.msk.bf16.mxu1 %vm295_vm2, %v996_v6  ;;  %v1007_v17 = vld [vmem:[%s1059_s20 + $0x30] sm:$0xff]   ;;  %v1009_v19 = vld [vmem:[%s1059_s20 + $0x38] sm:$0xff]  }
  0x13   : > { %v1008_v18 = vld [vmem:[%s1059_s20 + $0x70] sm:$0xff]   ;;  %v1010_v20 = vld [vmem:[%s1059_s20 + $0x78] sm:$0xff]  }
  0x14   : > { %953 = vmatmul.mubr.msk.bf16.vlgmr.msra.gmra.mxu0 %vm295_vm2, %v997_v7  ;;  %969 = vmatmul.mubr.msk.bf16.vlgmr.msra.gmra.mxu1 %vm295_vm2, %v998_v8 }
  0x15   : > { %956 = vmatprep.mubr.msk.bf16.mxu0 %vm295_vm2, %v999_v9  ;;  %972 = vmatprep.mubr.msk.bf16.mxu1 %vm295_vm2, %v1000_v10 }
  0x1c   : > { %957 = vmatmul.mubr.msk.bf16.gmra.mxu0 %vm295_vm2, %v1001_v11  ;;  %973 = vmatmul.mubr.msk.bf16.gmra.mxu1 %vm295_vm2, %v1002_v12 }
  0x1d   : > { %960 = vmatprep.mubr.msk.bf16.mxu0 %vm295_vm2, %v1003_v13  ;;  %976 = vmatprep.mubr.msk.bf16.mxu1 %vm295_vm2, %v1004_v14 }
  0x24   : > { %961 = vmatmul.mubr.msk.bf16.gmra.mxu0 %vm295_vm2, %v1005_v15  ;;  %977 = vmatmul.mubr.msk.bf16.gmra.mxu1 %vm295_vm2, %v1006_v16 }
  0x25   : > { %964 = vmatprep.mubr.msk.bf16.mxu0 %vm295_vm2, %v1007_v17  ;;  %980 = vmatprep.mubr.msk.bf16.mxu1 %vm295_vm2, %v1008_v18 }
  0x2c   : > { %965 = vmatmul.mubr.msk.bf16.gmra.mxu0 %vm295_vm2, %v1009_v19  ;;  %981 = vmatmul.mubr.msk.bf16.gmra.mxu1 %vm295_vm2, %v1010_v20 }
  0xd4   : > { %v954_v22 = vpop.f32.mrf.mxu0  ;;  %v970_v24 = vpop.f32.mrf.mxu1 }
  0xd5   : > { %v394_v23 = vadd.f32 %v954_v22, %v1096_v21  ;;  %v458_v25 = vadd.f32 %v970_v24, %v1096_v21 }
  0xd6   : > { %v385_v26 = vpop.f32.mrf.mxu0  ;;  %v449_v29 = vpop.f32.mrf.mxu1 }
  0xd7   : > { %vm514_vm3 = vcmp.gt.f32.partialorder %v394_v23, 0.0  ;;  %v546_v27 = vmul.f32 0.2, %v394_v23  ;;  %v386_v28 = vadd.f32 %v1096_v21, %v385_v26  ;;  %vm530_vm5 = vcmp.gt.f32.partialorder %v458_v25, 0.0 }
  0xd8   : > { %v562_v30 = vmul.f32 0.2, %v458_v25  ;;  %v450_v31 = vadd.f32 %v1096_v21, %v449_v29  ;;  %v955_v32 = vpop.f32.mrf.mxu0  ;;  %v971_v36 = vpop.f32.mrf.mxu1 }
  0xd9   : > { %v578_v33 = vsel %vm514_vm3, %v394_v23, %v546_v27  ;;  %vm512_vm6 = vcmp.gt.f32.partialorder %v386_v28, 0.0  ;;  %v544_v34 = vmul.f32 0.2, %v386_v28  ;;  %v397_v35 = vadd.f32 %v955_v32, %v1096_v21 }
  0xda   : > { %v903_v37 = vpack.c.bf16 %v578_v33, %v578_v33  ;;  %v594_v38 = vsel %vm530_vm5, %v458_v25, %v562_v30  ;;  %vm528_vm7 = vcmp.gt.f32.partialorder %v450_v31, 0.0  ;;  %v560_v39 = vmul.f32 0.2, %v450_v31  ;;  %v388_v40 = vpop.f32.mrf.mxu0  ;;  %v452_v44 = vpop.f32.mrf.mxu1 }
  0xdb   : > { %v919_v41 = vpack.c.bf16 %v594_v38, %v594_v38  ;;  %v576_v42 = vsel %vm512_vm6, %v386_v28, %v544_v34  ;;  %vm515_vm8 = vcmp.gt.f32.partialorder %v397_v35, 0.0  ;;  %v547_v43 = vmul.f32 0.2, %v397_v35 }
  0xdc   : > { %739 = vst.msk [vmem:[%s1107_s25 + $0x8] sm:$0xf] %vm736_vm4, %v903_v37  ;;  %v901_v45 = vpack.c.bf16 %v576_v42, %v576_v42  ;;  %v592_v46 = vsel %vm528_vm7, %v450_v31, %v560_v39  ;;  %v461_v47 = vadd.f32 %v971_v36, %v1096_v21  ;;  %v389_v48 = vadd.f32 %v1096_v21, %v388_v40  ;;  %v958_v49 = vpop.f32.mrf.mxu0  ;;  %v974_v54 = vpop.f32.mrf.mxu1 }
  0xdd   : > { %755 = vst.msk [vmem:[%s1107_s25 + $0x48] sm:$0xf] %vm736_vm4, %v919_v41  ;;  %v917_v50 = vpack.c.bf16 %v592_v46, %v592_v46  ;;  %v579_v51 = vsel %vm515_vm8, %v397_v35, %v547_v43  ;;  %v453_v52 = vadd.f32 %v1096_v21, %v452_v44  ;;  %v410_v53 = vadd.f32 %v958_v49, %v1096_v21 }
  0xde   : > { %737 = vst.msk [vmem:[%s1107_s25] sm:$0xf] %vm736_vm4, %v901_v45  ;;  %v904_v55 = vpack.c.bf16 %v579_v51, %v579_v51  ;;  %vm531_vm9 = vcmp.gt.f32.partialorder %v461_v47, 0.0  ;;  %v563_v56 = vmul.f32 0.2, %v461_v47  ;;  %vm513_vm10 = vcmp.gt.f32.partialorder %v389_v48, 0.0  ;;  %v401_v57 = vpop.f32.mrf.mxu0  ;;  %v465_v60 = vpop.f32.mrf.mxu1 }
  0xdf   : > { %753 = vst.msk [vmem:[%s1107_s25 + $0x40] sm:$0xf] %vm736_vm4, %v917_v50  ;;  %v545_v58 = vmul.f32 0.2, %v389_v48  ;;  %vm529_vm11 = vcmp.gt.f32.partialorder %v453_v52, 0.0  ;;  %vm518_vm12 = vcmp.gt.f32.partialorder %v410_v53, 0.0  ;;  %v474_v63 = vadd.f32 %v974_v54, %v1096_v21 }
  0xe0   : > { %v561_v59 = vmul.f32 0.2, %v453_v52  ;;  %740 = vst.msk [vmem:[%s1107_s25 + $0xc] sm:$0xf] %vm736_vm4, %v904_v55  ;;  %v595_v61 = vsel %vm531_vm9, %v461_v47, %v563_v56  ;;  %v550_v62 = vmul.f32 0.2, %v410_v53  ;;  %v402_v0 = vadd.f32 %v1096_v21, %v401_v57  ;;  %v959_v1 = vpop.f32.mrf.mxu0  ;;  %v975_v6 = vpop.f32.mrf.mxu1 }
  0xe1   : > { %v920_v2 = vpack.c.bf16 %v595_v61, %v595_v61  ;;  %v577_v3 = vsel %vm513_vm10, %v389_v48, %v545_v58  ;;  %v466_v5 = vadd.f32 %v1096_v21, %v465_v60  ;;  %vm534_vm13 = vcmp.gt.f32.partialorder %v474_v63, 0.0 }
  0xe2   : > { %v593_v4 = vsel %vm529_vm11, %v453_v52, %v561_v59  ;;  %v902_v7 = vpack.c.bf16 %v577_v3, %v577_v3  ;;  %v582_v9 = vsel %vm518_vm12, %v410_v53, %v550_v62  ;;  %v404_v10 = vpop.f32.mrf.mxu0  ;;  %v566_v12 = vmul.f32 0.2, %v474_v63  ;;  %v468_v14 = vpop.f32.mrf.mxu1 }
  0xe3   : > { %v918_v8 = vpack.c.bf16 %v593_v4, %v593_v4  ;;  %756 = vst.msk [vmem:[%s1107_s25 + $0x4c] sm:$0xf] %vm736_vm4, %v920_v2  ;;  %v907_v11 = vpack.c.bf16 %v582_v9, %v582_v9  ;;  %vm516_vm14 = vcmp.gt.f32.partialorder %v402_v0, 0.0  ;;  %v548_v13 = vmul.f32 0.2, %v402_v0 }
  0xe4   : > { %738 = vst.msk [vmem:[%s1107_s25 + $0x4] sm:$0xf] %vm736_vm4, %v902_v7  ;;  %vm532_vm15 = vcmp.gt.f32.partialorder %v466_v5, 0.0  ;;  %v564_v15 = vmul.f32 0.2, %v466_v5  ;;  %v413_v16 = vadd.f32 %v959_v1, %v1096_v21  ;;  %v477_v17 = vadd.f32 %v975_v6, %v1096_v21  ;;  %v962_v18 = vpop.f32.mrf.mxu0  ;;  %v978_v24 = vpop.f32.mrf.mxu1 }
  0xe5   : > { %754 = vst.msk [vmem:[%s1107_s25 + $0x44] sm:$0xf] %vm736_vm4, %v918_v8  ;;  %743 = vst.msk [vmem:[%s1107_s25 + $0x18] sm:$0xf] %vm736_vm4, %v907_v11  ;;  %v598_v19 = vsel %vm534_vm13, %v474_v63, %v566_v12  ;;  %v580_v20 = vsel %vm516_vm14, %v402_v0, %v548_v13  ;;  %v405_v22 = vadd.f32 %v1096_v21, %v404_v10 }
  0xe6   : > { %v469_v23 = vadd.f32 %v1096_v21, %v468_v14  ;;  %v923_v25 = vpack.c.bf16 %v598_v19, %v598_v19  ;;  %v905_v26 = vpack.c.bf16 %v580_v20, %v580_v20  ;;  %v596_v27 = vsel %vm532_vm15, %v466_v5, %v564_v15  ;;  %v417_v28 = vpop.f32.mrf.mxu0  ;;  %v481_v32 = vpop.f32.mrf.mxu1 }
  0xe7   : > { %vm519_vm0 = vcmp.gt.f32.partialorder %v413_v16, 0.0  ;;  %v921_v29 = vpack.c.bf16 %v596_v27, %v596_v27  ;;  %v551_v30 = vmul.f32 0.2, %v413_v16  ;;  %vm535_vm1 = vcmp.gt.f32.partialorder %v477_v17, 0.0 }
  0xe8   : > { %v567_v31 = vmul.f32 0.2, %v477_v17  ;;  %759 = vst.msk [vmem:[%s1107_s25 + $0x58] sm:$0xf] %vm736_vm4, %v923_v25  ;;  %741 = vst.msk [vmem:[%s1107_s25 + $0x10] sm:$0xf] %vm736_vm4, %v905_v26  ;;  %v963_v35 = vpop.f32.mrf.mxu0  ;;  %v426_v38 = vadd.f32 %v962_v18, %v1096_v21  ;;  %v490_v39 = vadd.f32 %v978_v24, %v1096_v21  ;;  %v979_v40 = vpop.f32.mrf.mxu1  ;;  %v418_v51 = vadd.f32 %v1096_v21, %v417_v28 }
  0xe9   : > { %vm517_vm2 = vcmp.gt.f32.partialorder %v405_v22, 0.0  ;;  %v549_v33 = vmul.f32 0.2, %v405_v22  ;;  %vm533_vm3 = vcmp.gt.f32.partialorder %v469_v23, 0.0  ;;  %v565_v34 = vmul.f32 0.2, %v469_v23 }
  0xea   : > { %757 = vst.msk [vmem:[%s1107_s25 + $0x50] sm:$0xf] %vm736_vm4, %v921_v29  ;;  %v583_v36 = vsel %vm519_vm0, %v413_v16, %v551_v30  ;;  %v599_v37 = vsel %vm535_vm1, %v477_v17, %v567_v31  ;;  %v420_v45 = vpop.f32.mrf.mxu0  ;;  %vm522_vm5 = vcmp.gt.f32.partialorder %v426_v38, 0.0  ;;  %v554_v48 = vmul.f32 0.2, %v426_v38  ;;  %v484_v49 = vpop.f32.mrf.mxu1 }
  0xeb   : > { %v908_v41 = vpack.c.bf16 %v583_v36, %v583_v36  ;;  %v924_v42 = vpack.c.bf16 %v599_v37, %v599_v37  ;;  %v581_v43 = vsel %vm517_vm2, %v405_v22, %v549_v33  ;;  %v597_v44 = vsel %vm533_vm3, %v469_v23, %v565_v34 }
  0xec   : > { %v906_v46 = vpack.c.bf16 %v581_v43, %v581_v43  ;;  %v922_v47 = vpack.c.bf16 %v597_v44, %v597_v44  ;;  %vm538_vm6 = vcmp.gt.f32.partialorder %v490_v39, 0.0  ;;  %v570_v50 = vmul.f32 0.2, %v490_v39  ;;  %v966_v53 = vpop.f32.mrf.mxu0  ;;  %v982_v58 = vpop.f32.mrf.mxu1 }
  0xed   : > { %744 = vst.msk [vmem:[%s1107_s25 + $0x1c] sm:$0xf] %vm736_vm4, %v908_v41  ;;  %760 = vst.msk [vmem:[%s1107_s25 + $0x5c] sm:$0xf] %vm736_vm4, %v924_v42  ;;  %v482_v52 = vadd.f32 %v1096_v21, %v481_v32  ;;  %v586_v54 = vsel %vm522_vm5, %v426_v38, %v554_v48  ;;  %v429_v55 = vadd.f32 %v963_v35, %v1096_v21  ;;  %vm520_vm7 = vcmp.gt.f32.partialorder %v418_v51, 0.0 }
  0xee   : > { %742 = vst.msk [vmem:[%s1107_s25 + $0x14] sm:$0xf] %vm736_vm4, %v906_v46  ;;  %758 = vst.msk [vmem:[%s1107_s25 + $0x54] sm:$0xf] %vm736_vm4, %v922_v47  ;;  %v493_v56 = vadd.f32 %v979_v40, %v1096_v21  ;;  %v421_v57 = vadd.f32 %v1096_v21, %v420_v45  ;;  %v911_v59 = vpack.c.bf16 %v586_v54, %v586_v54  ;;  %v552_v61 = vmul.f32 0.2, %v418_v51  ;;  %v433_v0 = vpop.f32.mrf.mxu0  ;;  %v497_v4 = vpop.f32.mrf.mxu1 }
  0xef   : > { %v602_v60 = vsel %vm538_vm6, %v490_v39, %v570_v50  ;;  %vm536_vm8 = vcmp.gt.f32.partialorder %v482_v52, 0.0  ;;  %v568_v63 = vmul.f32 0.2, %v482_v52  ;;  %vm523_vm9 = vcmp.gt.f32.partialorder %v429_v55, 0.0 }
  0xf0   : > { %v927_v62 = vpack.c.bf16 %v602_v60, %v602_v60  ;;  %747 = vst.msk [vmem:[%s1107_s25 + $0x28] sm:$0xf] %vm736_vm4, %v911_v59  ;;  %v584_v1 = vsel %vm520_vm7, %v418_v51, %v552_v61  ;;  %v555_v2 = vmul.f32 0.2, %v429_v55  ;;  %vm539_vm10 = vcmp.gt.f32.partialorder %v493_v56, 0.0  ;;  %v967_v16 = vpop.f32.mrf.mxu0  ;;  %v983_v20 = vpop.f32.mrf.mxu1 }
  0xf1   : > { %v571_v3 = vmul.f32 0.2, %v493_v56  ;;  %v909_v5 = vpack.c.bf16 %v584_v1, %v584_v1  ;;  %v600_v6 = vsel %vm536_vm8, %v482_v52, %v568_v63  ;;  %vm521_vm11 = vcmp.gt.f32.partialorder %v421_v57, 0.0 }
  0xf2   : > { %763 = vst.msk [vmem:[%s1107_s25 + $0x68] sm:$0xf] %vm736_vm4, %v927_v62  ;;  %v553_v7 = vmul.f32 0.2, %v421_v57  ;;  %v925_v8 = vpack.c.bf16 %v600_v6, %v600_v6  ;;  %v587_v9 = vsel %vm523_vm9, %v429_v55, %v555_v2  ;;  %v485_v11 = vadd.f32 %v1096_v21, %v484_v49  ;;  %v436_v31 = vpop.f32.mrf.mxu0  ;;  %v500_v35 = vpop.f32.mrf.mxu1 }
  0xf3   : > { %v603_v10 = vsel %vm539_vm10, %v493_v56, %v571_v3  ;;  %745 = vst.msk [vmem:[%s1107_s25 + $0x20] sm:$0xf] %vm736_vm4, %v909_v5  ;;  %v912_v12 = vpack.c.bf16 %v587_v9, %v587_v9  ;;  %v442_v15 = vadd.f32 %v966_v53, %v1096_v21  ;;  %v506_v19 = vadd.f32 %v982_v58, %v1096_v21 }
  0xf4   : > { %v928_v13 = vpack.c.bf16 %v603_v10, %v603_v10  ;;  %v585_v14 = vsel %vm521_vm11, %v421_v57, %v553_v7  ;;  %761 = vst.msk [vmem:[%s1107_s25 + $0x60] sm:$0xf] %vm736_vm4, %v925_v8  ;;  %vm537_vm12 = vcmp.gt.f32.partialorder %v485_v11, 0.0  ;;  %v569_v18 = vmul.f32 0.2, %v485_v11 }
  0xf5   : > { %v910_v17 = vpack.c.bf16 %v585_v14, %v585_v14  ;;  %748 = vst.msk [vmem:[%s1107_s25 + $0x2c] sm:$0xf] %vm736_vm4, %v912_v12  ;;  %vm526_vm13 = vcmp.gt.f32.partialorder %v442_v15, 0.0  ;;  %v558_v22 = vmul.f32 0.2, %v442_v15  ;;  %v434_v23 = vadd.f32 %v1096_v21, %v433_v0 }
  0xf6   : > { %764 = vst.msk [vmem:[%s1107_s25 + $0x6c] sm:$0xf] %vm736_vm4, %v928_v13  ;;  %v498_v24 = vadd.f32 %v1096_v21, %v497_v4  ;;  %v601_v25 = vsel %vm537_vm12, %v485_v11, %v569_v18  ;;  %vm542_vm14 = vcmp.gt.f32.partialorder %v506_v19, 0.0  ;;  %v574_v26 = vmul.f32 0.2, %v506_v19 }
  0xf7   : > { %746 = vst.msk [vmem:[%s1107_s25 + $0x24] sm:$0xf] %vm736_vm4, %v910_v17  ;;  %v445_v27 = vadd.f32 %v967_v16, %v1096_v21  ;;  %v926_v28 = vpack.c.bf16 %v601_v25, %v601_v25  ;;  %v590_v29 = vsel %vm526_vm13, %v442_v15, %v558_v22  ;;  %vm524_vm15 = vcmp.gt.f32.partialorder %v434_v23, 0.0 }
  0xf8   : > { %v556_v30 = vmul.f32 0.2, %v434_v23  ;;  %v915_v32 = vpack.c.bf16 %v590_v29, %v590_v29  ;;  %v606_v33 = vsel %vm542_vm14, %v506_v19, %v574_v26  ;;  %vm540_vm0 = vcmp.gt.f32.partialorder %v498_v24, 0.0 }
  0xf9   : > { %v572_v34 = vmul.f32 0.2, %v498_v24  ;;  %762 = vst.msk [vmem:[%s1107_s25 + $0x64] sm:$0xf] %vm736_vm4, %v926_v28  ;;  %v931_v36 = vpack.c.bf16 %v606_v33, %v606_v33  ;;  %vm527_vm1 = vcmp.gt.f32.partialorder %v445_v27, 0.0  ;;  %v509_v41 = vadd.f32 %v983_v20, %v1096_v21 }
  0xfa   : > { %v588_v37 = vsel %vm524_vm15, %v434_v23, %v556_v30  ;;  %v559_v38 = vmul.f32 0.2, %v445_v27  ;;  %751 = vst.msk [vmem:[%s1107_s25 + $0x38] sm:$0xf] %vm736_vm4, %v915_v32  ;;  %v437_v42 = vadd.f32 %v1096_v21, %v436_v31  ;;  %v501_v45 = vadd.f32 %v1096_v21, %v500_v35 }
  0xfb   : > { %v913_v39 = vpack.c.bf16 %v588_v37, %v588_v37  ;;  %v604_v40 = vsel %vm540_vm0, %v498_v24, %v572_v34  ;;  %767 = vst.msk [vmem:[%s1107_s25 + $0x78] sm:$0xf] %vm736_vm4, %v931_v36  ;;  %vm543_vm2 = vcmp.gt.f32.partialorder %v509_v41, 0.0  ;;  %v575_v47 = vmul.f32 0.2, %v509_v41 }
  0xfc   : > { %v929_v43 = vpack.c.bf16 %v604_v40, %v604_v40  ;;  %v591_v44 = vsel %vm527_vm1, %v445_v27, %v559_v38  ;;  %vm525_vm3 = vcmp.gt.f32.partialorder %v437_v42, 0.0  ;;  %v557_v48 = vmul.f32 0.2, %v437_v42 }
  0xfd   : > { %749 = vst.msk [vmem:[%s1107_s25 + $0x30] sm:$0xf] %vm736_vm4, %v913_v39  ;;  %v916_v46 = vpack.c.bf16 %v591_v44, %v591_v44  ;;  %vm541_vm5 = vcmp.gt.f32.partialorder %v501_v45, 0.0  ;;  %v573_v49 = vmul.f32 0.2, %v501_v45  ;;  %v607_v50 = vsel %vm543_vm2, %v509_v41, %v575_v47 }
  0xfe   : > { %765 = vst.msk [vmem:[%s1107_s25 + $0x70] sm:$0xf] %vm736_vm4, %v929_v43  ;;  %v932_v51 = vpack.c.bf16 %v607_v50, %v607_v50  ;;  %v589_v52 = vsel %vm525_vm3, %v437_v42, %v557_v48 }
  0xff   : > { %752 = vst.msk [vmem:[%s1107_s25 + $0x3c] sm:$0xf] %vm736_vm4, %v916_v46  ;;  %v605_v21 = vsel %vm541_vm5, %v501_v45, %v573_v49  ;;  %v914_v53 = vpack.c.bf16 %v589_v52, %v589_v52 }
 0x100   : > { %v930_v54 = vpack.c.bf16 %v605_v21, %v605_v21  ;;  %768 = vst.msk [vmem:[%s1107_s25 + $0x7c] sm:$0xf] %vm736_vm4, %v932_v51 }
 0x101   : > { %750 = vst.msk [vmem:[%s1107_s25 + $0x34] sm:$0xf] %vm736_vm4, %v914_v53 }
 0x102   : > { %766 = vst.msk [vmem:[%s1107_s25 + $0x74] sm:$0xf] %vm736_vm4, %v930_v54 }
 0x103 PF: > { %s13_s12 = sadd.s32 1, %s1017_s12  }
 0x104   : > { %p10_p4 = scmp.ge.s32.totalorder %s13_s12, 4  }
 0x106   :  { %12 = sbr.rel (!%p10_p4) target bundleno = 1 (0x1), region = 62 }

</bundles_post_ra>
